<compile_context>
chip_gen: v7x
topology: tpu7x:2x2x1
jax: 0.10.0
libtpu: 0.0.40
codegen_flags: <defaults>
</compile_context>

<pallas_src>
import jax
import jax.numpy as jnp
from jax.experimental import pallas as pl
from jax.experimental.pallas import tpu as pltpu


# ---------------------------------------------------------------------------
# Chunk planning (all static Python ints, resolved at trace time).
# ---------------------------------------------------------------------------
_TARGET_CHUNK_BYTES = 8 * 1024 * 1024   # multi-MiB descriptors saturate the DMA engines
_MAX_CHUNKS = 8                          # a handful of descriptors is plenty
_MIN_SPLIT_BYTES = 2 * 1024 * 1024       # >= 2 MiB: use >= 2 descriptors in flight
_MIN_PALLAS_BYTES = 256 * 1024           # below this, plain XLA copy (launch overhead dominates)


def _plan_chunks(rows, total_bytes):
    """Split the leading axis into up to _MAX_CHUNKS contiguous row ranges."""
    n = max(1, min(_MAX_CHUNKS, pl.cdiv(total_bytes, _TARGET_CHUNK_BYTES)))
    if total_bytes >= _MIN_SPLIT_BYTES:
        n = max(n, 2)                    # keep >=2 DMAs in flight for mid/large copies
    n = min(n, rows)
    base, rem = divmod(rows, n)
    chunks = []
    start = 0
    for i in range(n):
        size = base + (1 if i < rem else 0)
        if size > 0:
            chunks.append((start, size))
            start += size
    return tuple(chunks)


# ---------------------------------------------------------------------------
# Kernel: chunked HBM -> HBM identity copy (no VMEM round trip).
# ---------------------------------------------------------------------------
def _make_hbm_copy_kernel(chunks):
    """Build a kernel that DMAs static (start, size) row ranges HBM->HBM."""

    def kernel(x_ref, o_ref, sems):
        copies = []
        # Issue all descriptors back-to-back, then wait — lets the DMA engines
        # overlap the transfers and saturate HBM bandwidth.
        for i, (start, size) in enumerate(chunks):
            cp = pltpu.make_async_copy(
                x_ref.at[pl.ds(start, size)],
                o_ref.at[pl.ds(start, size)],
                sems.at[i],
            )
            cp.start()
            copies.append(cp)
        for cp in copies:
            cp.wait()

    return kernel


def _pallas_identity_copy(features):
    """Materialize one distinct copy of `features` via chunked HBM->HBM DMA."""
    total_bytes = features.size * jnp.dtype(features.dtype).itemsize

    if features.ndim == 0 or features.size == 0 or total_bytes < _MIN_PALLAS_BYTES:
        # TODO(synk): tiny / scalar inputs — Pallas launch overhead dominates,
        # so use a plain XLA copy (semantically identical under JAX immutability).
        return jnp.copy(features)

    rows = features.shape[0]
    chunks = _plan_chunks(rows, total_bytes)

    return pl.pallas_call(
        _make_hbm_copy_kernel(chunks),
        in_specs=[pl.BlockSpec(memory_space=pl.ANY)],    # raw HBM ref, no auto-DMA
        out_specs=pl.BlockSpec(memory_space=pl.ANY),     # output stays in HBM
        out_shape=jax.ShapeDtypeStruct(features.shape, features.dtype),
        scratch_shapes=[pltpu.SemaphoreType.DMA((len(chunks),))],
        cost_estimate=pl.CostEstimate(
            flops=0, transcendentals=0, bytes_accessed=2 * total_bytes),
    )(features)


# ---------------------------------------------------------------------------
# Module-equivalent forward functions.
# ---------------------------------------------------------------------------
def custom_mlp_extractor_forward(features, *, use_pallas=False):
    """Pallas equivalent of CustomMlpExtractor.forward -> (actor_out, critic_out).

    Default (use_pallas=False): pure pass-through, exactly mirroring the
    PyTorch module which returns the same tensor twice — no kernel, no copy.
    use_pallas=True: the actor head is the input array itself; the critic head
    is materialized as a distinct buffer via the chunked HBM->HBM DMA copy.
    """
    if not use_pallas:
        return features, features
    critic_out = _pallas_identity_copy(features)
    return features, critic_out


def forward_actor(features):
    return features


def forward_critic(features):
    return features


if __name__ == "__main__":
    # net_arch / activation_fn are declared in __init__ but never used in
    # forward; no MLP layers exist, so none are implemented here.
    key = jax.random.PRNGKey(0)
    batch, feature_dim = 2, 32
    features = jax.random.normal(key, (batch, feature_dim), dtype=jnp.float32)

    # Recommended fast path (matches PyTorch aliasing semantics, zero copies).
    a_fast, c_fast = custom_mlp_extractor_forward(features)
    assert jnp.array_equal(a_fast, features)
    assert jnp.array_equal(c_fast, features)

    # Materialized path on the tiny demo input: below the Pallas threshold,
    # falls back to a plain XLA copy (launch overhead would dominate).
    actor_out, critic_out = custom_mlp_extractor_forward(features, use_pallas=True)
    jax.block_until_ready((actor_out, critic_out))
    assert actor_out.shape == (batch, feature_dim)
    assert critic_out.shape == (batch, feature_dim)
    assert jnp.array_equal(actor_out, features)
    assert jnp.array_equal(critic_out, features)

    # Mid-size input: single-descriptor HBM->HBM Pallas DMA copy.
    mid = jax.random.normal(key, (1024, 256), dtype=jnp.float32)     # 1 MiB
    _, mid_critic = custom_mlp_extractor_forward(mid, use_pallas=True)
    jax.block_until_ready(mid_critic)
    assert mid_critic.shape == mid.shape
    assert jnp.array_equal(mid_critic, mid)

    # Larger input: multi-chunk HBM->HBM DMA copy (>= 2 descriptors in flight).
    big = jax.random.normal(key, (2048, 1024), dtype=jnp.float32)    # 8 MiB
    _, big_critic = custom_mlp_extractor_forward(big, use_pallas=True)
    jax.block_until_ready(big_critic)
    assert big_critic.shape == big.shape
    assert jnp.array_equal(big_critic, big)

    print("KERNEL_OK")
</pallas_src>

<mosaic_0001>
module attributes {stable_mosaic.version = 11 : i64} {
  func.func @kernel(%arg0: memref<1024x256xf32, #tpu.memory_space<any>>, %arg1: memref<1024x256xf32, #tpu.memory_space<any>>, %arg2: memref<1x!tpu.dma_semaphore, #tpu.memory_space<semaphore_mem>>) attributes {dimension_semantics = [], scalar_prefetch = 0 : i64, scratch_operands = 1 : i64, tpu.core_type = #tpu.core_type<tc>} {
    %c0_i32 = arith.constant 0 : i32
    %c0_i32_0 = arith.constant 0 : i32
    %c0_i32_1 = arith.constant 0 : i32
    %0 = tpu.memref_slice %arg0[%c0_i32_0, %c0_i32_1] : memref<1024x256xf32, #tpu.memory_space<any>> -> memref<1024x256xf32, #tpu.memory_space<any>>
    %c0_i32_2 = arith.constant 0 : i32
    %c0_i32_3 = arith.constant 0 : i32
    %1 = tpu.memref_slice %arg1[%c0_i32_2, %c0_i32_3] : memref<1024x256xf32, #tpu.memory_space<any>> -> memref<1024x256xf32, #tpu.memory_space<any>>
    %2 = tpu.memref_slice %arg2[%c0_i32] : memref<1x!tpu.dma_semaphore, #tpu.memory_space<semaphore_mem>> -> memref<1x!tpu.dma_semaphore, #tpu.memory_space<semaphore_mem>>
    %3 = tpu.memref_squeeze %2 : memref<1x!tpu.dma_semaphore, #tpu.memory_space<semaphore_mem>> -> memref<!tpu.dma_semaphore, #tpu.memory_space<semaphore_mem>>
    tpu.enqueue_dma source(%0 : memref<1024x256xf32, #tpu.memory_space<any>>) target(%1 : memref<1024x256xf32, #tpu.memory_space<any>>) target_semaphore(%3 : memref<!tpu.dma_semaphore, #tpu.memory_space<semaphore_mem>>)
    %c0_i32_4 = arith.constant 0 : i32
    %c0_i32_5 = arith.constant 0 : i32
    %c0_i32_6 = arith.constant 0 : i32
    %4 = tpu.memref_slice %arg0[%c0_i32_5, %c0_i32_6] : memref<1024x256xf32, #tpu.memory_space<any>> -> memref<1024x256xf32, #tpu.memory_space<any>>
    %c0_i32_7 = arith.constant 0 : i32
    %c0_i32_8 = arith.constant 0 : i32
    %5 = tpu.memref_slice %arg1[%c0_i32_7, %c0_i32_8] : memref<1024x256xf32, #tpu.memory_space<any>> -> memref<1024x256xf32, #tpu.memory_space<any>>
    %6 = tpu.memref_slice %arg2[%c0_i32_4] : memref<1x!tpu.dma_semaphore, #tpu.memory_space<semaphore_mem>> -> memref<1x!tpu.dma_semaphore, #tpu.memory_space<semaphore_mem>>
    %7 = tpu.memref_squeeze %6 : memref<1x!tpu.dma_semaphore, #tpu.memory_space<semaphore_mem>> -> memref<!tpu.dma_semaphore, #tpu.memory_space<semaphore_mem>>
    tpu.wait_dma2 semaphore(%7 : memref<!tpu.dma_semaphore, #tpu.memory_space<semaphore_mem>>) src(%4 : memref<1024x256xf32, #tpu.memory_space<any>>) dst(%5 : memref<1024x256xf32, #tpu.memory_space<any>>)
    return
  }
}

</mosaic_0001>

<bundles_post_ra>
// kernel: tpu_custom_call.1
= control target key start
LH: loop header
LB: loop body
LE: loop exit
PB: predicated region body
PF: predicated region fallthrough
CT: control target
= control target key end

     0   :  { %s35_s6 = smov [#allocation2]   ;;  %s36_s7 = smov [#allocation3]   ;;  %s54_s0 = inlined_call_operand.hbm [shape: f32[1024,256], index: 0, kind: input, shape index: {}]   ;;  %s55_s1 = inlined_call_operand.hbm [shape: f32[1024,256], index: 1, kind: output, shape index: {}]  }
   0x1   :  { %s37_s8 = smov 0  }
   0x2   :  { %18 = dma.general %s54_s0, 32768, %s55_s1, %s35_s6, %s36_s7, [#allocation4], %s37_s8, 0  }
   0x3   :  { %33 = dma.done.wait [#allocation2], 32768 }
   0x4   :  { %34 = vsyncadd [#allocation2], 4294934528 }
   0x5   :  { %23 = vsyncmov [#allocation2] }
   0x8   :  { %s24_s13 = vpop.sfrf %23 }
   0x9   :  { %p29_p0 = scmp.ne.s32.totalorder %s24_s13, 0 }
   0xb   :  { %28 = shalt.err (%p29_p0)  }

</bundles_post_ra>
